<compile_context>
chip_gen: v7x
topology: tpu7x:2x2x1
jax: 0.10.0
libtpu: 0.0.40
codegen_flags: <defaults>
</compile_context>

<pallas_src>
import functools

import jax
import jax.numpy as jnp
from jax.experimental import pallas as pl
from jax.experimental.pallas import tpu as pltpu


def _dice_partial_kernel(y_pred_ref, y_true_ref, out_ref, *,
                         num_classes, hw, tile, ragged):
    yp = y_pred_ref[...]                                   # (N, C, T), native dtype
    labels = y_true_ref[...].astype(jnp.int32)             # (N, T)

    lane_ok = None
    if ragged:
        # Mask lanes of the (partial) last tile that lie beyond H*W; OOB block
        # contents are unspecified, so zero them via select (NaN-safe).
        t = pl.program_id(0)
        pos = t * tile + jax.lax.broadcasted_iota(jnp.int32, (1, tile), 1)
        lane_ok = pos < hw                                  # (1, T)
        yp = jnp.where(lane_ok[:, None, :], yp, 0.0)

    # One-hot compare against an in-register class iota (sublane axis, built once
    # per tile with a size-1 N axis to keep VALU work low).
    class_ids = jax.lax.broadcasted_iota(jnp.int32, (1, num_classes, tile), 1)
    onehot = labels[:, None, :] == class_ids                # (N, C, T) bool

    # Per-tile reductions (VPU cross-vreg adds + XLU lane/sublane reduce); f32 accumulation.
    inter = jnp.sum(jnp.where(onehot, yp, 0.0), dtype=jnp.float32)
    pred_sum = jnp.sum(yp, dtype=jnp.float32)
    valid = (labels >= 0) & (labels < num_classes)          # one-hot row sums
    if ragged:
        valid = valid & lane_ok
    cnt = jnp.sum(valid.astype(jnp.float32))

    # Lane-dense partial write: one (3, 128) f32 block per tile (unmasked stores).
    out_ref[0, 0:1, :] = jnp.full((1, 128), inter, dtype=jnp.float32)
    out_ref[0, 1:2, :] = jnp.full((1, 128), pred_sum, dtype=jnp.float32)
    out_ref[0, 2:3, :] = jnp.full((1, 128), cnt, dtype=jnp.float32)


def _vmem_budget_bytes():
    """Per-generation VMEM budget for the pipelined blocks of this kernel."""
    cap = 64 << 20  # conservative fallback = v7x per-core VMEM
    try:
        cap = int(pltpu.get_tpu_info().vmem_capacity_bytes)
    except Exception:
        pass
    # ~70% of physical, capped at 100 MiB on the 128-MiB parts; leaves headroom
    # for compiler-internal scratch / semaphores.
    return min(int(cap * 0.70), 100 << 20)


def dice_loss2(y_pred, y_true, weights=None, eps=1.0, max_tile=None):
    """Pallas implementation of DiceLoss2.forward.

    y_pred: (N, C, H, W) float (f32 or bf16), y_true: (N, H, W) integer labels
    (int8/int16/int32 all accepted and kept narrow across the DMA).
    """
    n, c, h, w = y_pred.shape
    hw = h * w

    # Flatten spatial dims (free, contiguous reshape) for a lane-dense layout.
    y_pred_f = y_pred.reshape(n, c, hw)
    y_true_f = y_true.reshape(n, hw)

    # VMEM-budget-driven lane tile (multiple of 128).  Pallas double-buffers each
    # input block; the (1,3,128) output block is negligible.
    budget = _vmem_budget_bytes()
    pred_bytes = jnp.dtype(y_pred.dtype).itemsize
    label_bytes = jnp.dtype(y_true.dtype).itemsize
    bytes_per_lane = 2 * (n * c * pred_bytes + n * label_bytes)
    fixed_overhead = 2 * (3 * 128 * 4) + (1 << 20)
    tile = max(128, ((budget - fixed_overhead) // bytes_per_lane) // 128 * 128)
    hw_pad128 = -(-hw // 128) * 128
    tile = min(tile, hw_pad128)
    if max_tile is not None:
        tile = min(tile, max(128, (max_tile // 128) * 128))
    # TODO(synk): if a huge N*C forces tile below ~512 lanes, add a second
    # "arbitrary" grid axis over N instead of shrinking the spatial tile further.
    num_tiles = -(-hw // tile)
    ragged = (hw % tile) != 0

    kernel = functools.partial(_dice_partial_kernel, num_classes=c, hw=hw,
                               tile=tile, ragged=ragged)

    partials = pl.pallas_call(
        kernel,
        out_shape=jax.ShapeDtypeStruct((num_tiles, 3, 128), jnp.float32),
        grid_spec=pltpu.PrefetchScalarGridSpec(
            num_scalar_prefetch=0,
            grid=(num_tiles,),
            in_specs=[
                # y_pred: full (N, C) with a lane-dense spatial tile, read once.
                # TODO(synk): if profiling shows exposed DMA, add
                # pipeline_mode=pl.Buffered(3) here and sweep 2 vs 3.
                pl.BlockSpec((n, c, tile), lambda t: (0, 0, t)),
                # labels: matching spatial tile; stays in its narrow dtype on the wire.
                pl.BlockSpec((n, tile), lambda t: (0, t)),
            ],
            out_specs=pl.BlockSpec((1, 3, 128), lambda t: (t, 0, 0)),
        ),
        compiler_params=pltpu.CompilerParams(
            # No carried state -> tiles are independent -> megacore-shardable on v7x.
            dimension_semantics=("parallel",),
            vmem_limit_bytes=int(budget),
        ),
    )(y_pred_f, y_true_f)

    # Tiny wrapper-side reduce of the per-tile partials + dice formula.
    sums = jnp.sum(partials[:, :, 0], axis=0)              # (3,)
    inter, pred_sum, cnt = sums[0], sums[1], sums[2]
    union = pred_sum + cnt
    dice = 1.0 - (2.0 * inter + eps) / (union + eps)
    if weights is None:
        return dice / c
    return jnp.sum(weights * dice) / c


def dice_loss2_ref(y_pred, y_true, weights=None, eps=1.0):
    """Pure-JAX reference of the PyTorch semantics."""
    c = y_pred.shape[1]
    onehot = jax.nn.one_hot(y_true, c, axis=1, dtype=jnp.float32)   # (N, C, H, W)
    yp = y_pred.astype(jnp.float32)
    inter = jnp.sum(yp * onehot)
    union = jnp.sum(yp) + jnp.sum(onehot)
    dice = 1.0 - (2.0 * inter + eps) / (union + eps)
    if weights is None:
        return dice / c
    return jnp.sum(weights * dice) / c


if __name__ == "__main__":
    key = jax.random.PRNGKey(0)
    k1, k2, k3, k4, k5, k6 = jax.random.split(key, 6)

    # Test 1: single lane-dense tile, no raggedness (H*W = 256), f32 preds, int32 labels.
    N, C, H, W = 2, 4, 16, 16
    y_pred = jax.nn.softmax(jax.random.normal(k1, (N, C, H, W), jnp.float32), axis=1)
    y_true = jax.random.randint(k2, (N, H, W), 0, C, dtype=jnp.int32)
    out = jax.block_until_ready(dice_loss2(y_pred, y_true, eps=1.0))
    ref = jax.block_until_ready(dice_loss2_ref(y_pred, y_true, eps=1.0))
    assert jnp.allclose(out, ref, atol=1e-5, rtol=1e-5), (out, ref)

    # Test 2: multi-tile grid + ragged last tile (H*W = 900, tile forced to 512),
    # narrow int8 labels including out-of-range labels (== C -> all-zero one-hot row).
    N2, C2, H2, W2 = 2, 5, 30, 30
    y_pred2 = jax.nn.softmax(jax.random.normal(k3, (N2, C2, H2, W2), jnp.float32), axis=1)
    y_true2 = jax.random.randint(k4, (N2, H2, W2), 0, C2 + 1, dtype=jnp.int8)
    out2 = jax.block_until_ready(dice_loss2(y_pred2, y_true2, eps=1.0, max_tile=512))
    ref2 = jax.block_until_ready(dice_loss2_ref(y_pred2, y_true2, eps=1.0))
    assert jnp.allclose(out2, ref2, atol=1e-5, rtol=1e-5), (out2, ref2)

    # Test 3: bf16 predictions (select stays bf16, reductions in f32), ragged single tile.
    N3, C3, H3, W3 = 2, 3, 24, 24
    y_pred3 = jax.nn.softmax(
        jax.random.normal(k5, (N3, C3, H3, W3), jnp.float32), axis=1).astype(jnp.bfloat16)
    y_true3 = jax.random.randint(k6, (N3, H3, W3), 0, C3, dtype=jnp.int32)
    out3 = jax.block_until_ready(dice_loss2(y_pred3, y_true3, eps=1.0))
    ref3 = jax.block_until_ready(dice_loss2_ref(y_pred3, y_true3, eps=1.0))
    assert jnp.allclose(out3, ref3, atol=1e-4, rtol=1e-4), (out3, ref3)

    print("KERNEL_OK")
</pallas_src>

<mosaic_0001>
module attributes {stable_mosaic.version = 11 : i64} {
  func.func @_dice_partial_kernel(%arg0: i32, %arg1: memref<2x4x256xf32, #tpu.memory_space<vmem>>, %arg2: memref<2x256xi32, #tpu.memory_space<vmem>>, %arg3: memref<1x3x128xf32, #tpu.memory_space<vmem>>) attributes {dimension_semantics = [#tpu.dimension_semantics<parallel>], iteration_bounds = array<i64: 1>, scalar_prefetch = 0 : i64, scratch_operands = 0 : i64, tpu.core_type = #tpu.core_type<tc>, window_params = [{transform_indices = @transform_0, window_bounds = array<i64: 2, 4, 256>}, {transform_indices = @transform_1, window_bounds = array<i64: 2, 256>}, {transform_indices = @transform_2, window_bounds = array<i64: 1, 3, 128>}]} {
    %c0 = arith.constant 0 : index
    %c0_0 = arith.constant 0 : index
    %c0_1 = arith.constant 0 : index
    %0 = vector.load %arg1[%c0, %c0_0, %c0_1] : memref<2x4x256xf32, #tpu.memory_space<vmem>>, vector<2x4x256xf32>
    %c0_2 = arith.constant 0 : index
    %c0_3 = arith.constant 0 : index
    %1 = vector.load %arg2[%c0_2, %c0_3] : memref<2x256xi32, #tpu.memory_space<vmem>>, vector<2x256xi32>
    %2 = tpu.iota {dimensions = array<i32: 1>} : vector<1x4x256xi32>
    %3 = vector.shape_cast %1 : vector<2x256xi32> to vector<2x1x256xi32>
    %4 = vector.broadcast %3 : vector<2x1x256xi32> to vector<2x4x256xi32>
    %5 = vector.broadcast %2 : vector<1x4x256xi32> to vector<2x4x256xi32>
    %6 = arith.cmpi eq, %4, %5 : vector<2x4x256xi32>
    %cst = arith.constant 0.000000e+00 : f32
    %7 = vector.broadcast %cst : f32 to vector<2x4x256xf32>
    %8 = arith.select %6, %0, %7 : vector<2x4x256xi1>, vector<2x4x256xf32>
    %9 = vector.shape_cast %8 : vector<2x4x256xf32> to vector<1x2x4x256xf32>
    %cst_4 = arith.constant dense<0.000000e+00> : vector<1xf32>
    %10 = vector.multi_reduction <add>, %9, %cst_4 [1, 2, 3] : vector<1x2x4x256xf32> to vector<1xf32>
    %11 = vector.shape_cast %10 : vector<1xf32> to vector<1x1x1x1xf32>
    %12 = vector.extract %11[0, 0, 0, 0] : f32 from vector<1x1x1x1xf32>
    %13 = vector.shape_cast %0 : vector<2x4x256xf32> to vector<1x2x4x256xf32>
    %cst_5 = arith.constant dense<0.000000e+00> : vector<1xf32>
    %14 = vector.multi_reduction <add>, %13, %cst_5 [1, 2, 3] : vector<1x2x4x256xf32> to vector<1xf32>
    %15 = vector.shape_cast %14 : vector<1xf32> to vector<1x1x1x1xf32>
    %16 = vector.extract %15[0, 0, 0, 0] : f32 from vector<1x1x1x1xf32>
    %c0_i32 = arith.constant 0 : i32
    %17 = vector.broadcast %c0_i32 : i32 to vector<2x256xi32>
    %18 = arith.cmpi sge, %1, %17 : vector<2x256xi32>
    %c4_i32 = arith.constant 4 : i32
    %19 = vector.broadcast %c4_i32 : i32 to vector<2x256xi32>
    %20 = arith.cmpi slt, %1, %19 : vector<2x256xi32>
    %21 = arith.andi %18, %20 : vector<2x256xi1>
    %22 = arith.extui %21 : vector<2x256xi1> to vector<2x256xi32>
    %23 = arith.sitofp %22 : vector<2x256xi32> to vector<2x256xf32>
    %24 = vector.shape_cast %23 : vector<2x256xf32> to vector<1x2x256xf32>
    %cst_6 = arith.constant dense<0.000000e+00> : vector<1xf32>
    %25 = vector.multi_reduction <add>, %24, %cst_6 [1, 2] : vector<1x2x256xf32> to vector<1xf32>
    %26 = vector.shape_cast %25 : vector<1xf32> to vector<1x1x1xf32>
    %27 = vector.extract %26[0, 0, 0] : f32 from vector<1x1x1xf32>
    %28 = vector.broadcast %12 : f32 to vector<1x128xf32>
    %c0_7 = arith.constant 0 : index
    %c0_8 = arith.constant 0 : index
    %c0_9 = arith.constant 0 : index
    %29 = vector.load %arg3[%c0_7, %c0_8, %c0_9] : memref<1x3x128xf32, #tpu.memory_space<vmem>>, vector<1x1x128xf32>
    %30 = vector.shape_cast %29 : vector<1x1x128xf32> to vector<1x128xf32>
    %31 = vector.shape_cast %28 : vector<1x128xf32> to vector<1x1x128xf32>
    tpu.vector_store %arg3[%c0_7, %c0_8, %c0_9], %31 {strides = array<i32>} : memref<1x3x128xf32, #tpu.memory_space<vmem>>, vector<1x1x128xf32>,
    %32 = vector.broadcast %16 : f32 to vector<1x128xf32>
    %c0_10 = arith.constant 0 : index
    %c1 = arith.constant 1 : index
    %c0_11 = arith.constant 0 : index
    %33 = vector.load %arg3[%c0_10, %c1, %c0_11] : memref<1x3x128xf32, #tpu.memory_space<vmem>>, vector<1x1x128xf32>
    %34 = vector.shape_cast %33 : vector<1x1x128xf32> to vector<1x128xf32>
    %35 = vector.shape_cast %32 : vector<1x128xf32> to vector<1x1x128xf32>
    tpu.vector_store %arg3[%c0_10, %c1, %c0_11], %35 {strides = array<i32>} : memref<1x3x128xf32, #tpu.memory_space<vmem>>, vector<1x1x128xf32>,
    %36 = vector.broadcast %27 : f32 to vector<1x128xf32>
    %c0_12 = arith.constant 0 : index
    %c2 = arith.constant 2 : index
    %c0_13 = arith.constant 0 : index
    %37 = vector.load %arg3[%c0_12, %c2, %c0_13] : memref<1x3x128xf32, #tpu.memory_space<vmem>>, vector<1x1x128xf32>
    %38 = vector.shape_cast %37 : vector<1x1x128xf32> to vector<1x128xf32>
    %39 = vector.shape_cast %36 : vector<1x128xf32> to vector<1x1x128xf32>
    tpu.vector_store %arg3[%c0_12, %c2, %c0_13], %39 {strides = array<i32>} : memref<1x3x128xf32, #tpu.memory_space<vmem>>, vector<1x1x128xf32>,
    return
  }
  func.func @transform_0(%arg0: i32) -> (i32, i32, i32) {
    %c0_i32 = arith.constant 0 : i32
    %c0_i32_0 = arith.constant 0 : i32
    %c0_i32_1 = arith.constant 0 : i32
    return %c0_i32, %c0_i32_0, %arg0 : i32, i32, i32
  }
  func.func @transform_1(%arg0: i32) -> (i32, i32) {
    %c0_i32 = arith.constant 0 : i32
    %c0_i32_0 = arith.constant 0 : i32
    return %c0_i32, %arg0 : i32, i32
  }
  func.func @transform_2(%arg0: i32) -> (i32, i32, i32) {
    %c0_i32 = arith.constant 0 : i32
    %c0_i32_0 = arith.constant 0 : i32
    %c0_i32_1 = arith.constant 0 : i32
    return %arg0, %c0_i32, %c0_i32_0 : i32, i32, i32
  }
}

</mosaic_0001>

<bundles_post_ra>
// kernel: tpu_custom_call.1
= control target key start
LH: loop header
LB: loop body
LE: loop exit
PB: predicated region body
PF: predicated region fallthrough
CT: control target
= control target key end

     0   :  { %7 = vsyncpa [#allocation3], 0  ;;  %s283_s0 = inlined_call_operand.hbm [shape: f32[2,4,256], index: 0, kind: input, shape index: {}]   ;;  %s284_s1 = inlined_call_operand.hbm [shape: s32[2,256], index: 1, kind: input, shape index: {}]   ;;  %s285_s2 = inlined_call_operand.vmem [shape: f32[1,3,128], index: 2, kind: output, shape index: {}]  }
   0x1   :  { %8 = vsyncpa [#allocation5], 0  ;;  %s218_s9 = smov [#allocation2]   ;;  %s170_s13 = scalar_lea.hbm %s283_s0, 256 }
   0x2   :  { %s14_s10 = sshll.u32 %s218_s9, 4  ;;  %p171_p0 = scmp.ne.s32.totalorder %s283_s0, %s170_s13  ;;  %s15_s10 = int_to_ptr.vmem [resolvable:$true] %s14_s10 }
   0x3   :  { %p174_p1 = scmp.lt.u32.totalorder %s170_s13, %s283_s0 }
   0x5   :  { %p176_p2 = pnand %p174_p1, %p171_p0 }
   0x7   :  { %179 = shalt.err (!%p176_p2)
}
   0x8   :  { %s180_s18 = scalar_lea.vmem %s15_s10, 256  ;;  %p185_p4 = scmp.lt.s32.totalorder %s15_s10, %s15_s10 }
   0x9   :  { %p181_p3 = scmp.ne.s32.totalorder %s15_s10, %s180_s18  ;;  %p186_p5 = scmp.lt.s32.totalorder %s180_s18, %s180_s18 }
   0xb   :  { %p187_p6 = por %p186_p5, %p185_p4 }
   0xd   :  { %p188_p7 = pnand %p187_p6, %p181_p3 }
   0xf   :  { %191 = shalt.err (!%p188_p7)
}
  0x10   :  { %s219_s19 = smov 128   ;;  %s220_s20 = smov 8  }
  0x11   :  { %20 = dma.hbm_to_vmem [thread:$0]  %s283_s0, 256, %s15_s10, [#allocation3], %s219_s19, %s219_s19, %s220_s20  }
  0x12   :  { %s221_s23 = smov [#allocation4]   ;;  %s192_s27 = scalar_lea.hbm %s284_s1, 64 }
  0x13   :  { %s27_s24 = sshll.u32 %s221_s23, 4  ;;  %p193_p8 = scmp.ne.s32.totalorder %s284_s1, %s192_s27  ;;  %s28_s24 = int_to_ptr.vmem [resolvable:$true] %s27_s24 }
  0x14   :  { %p196_p9 = scmp.lt.u32.totalorder %s192_s27, %s284_s1 }
  0x16   :  { %p198_p10 = pnand %p196_p9, %p193_p8 }
  0x18   :  { %201 = shalt.err (!%p198_p10)
}
  0x19   :  { %s202_s4 = scalar_lea.vmem %s28_s24, 64  ;;  %p207_p12 = scmp.lt.s32.totalorder %s28_s24, %s28_s24 }
  0x1a   :  { %p203_p11 = scmp.ne.s32.totalorder %s28_s24, %s202_s4  ;;  %p208_p13 = scmp.lt.s32.totalorder %s202_s4, %s202_s4 }
  0x1c   :  { %p209_p0 = por %p208_p13, %p207_p12 }
  0x1e   :  { %p210_p1 = pnand %p209_p0, %p203_p11 }
  0x20   :  { %213 = shalt.err (!%p210_p1)
}
  0x21   :  { %30 = dma.hbm_to_vmem [thread:$0]  %s284_s1, 64, %s28_s24, [#allocation5]  }
  0x22   :  { %214 = dma.done.wait [#allocation3], 256  }
  0x23   :  { %215 = vsyncadd [#allocation3], 4294967040 }
  0x24   :  { %216 = dma.done.wait [#allocation5], 64  }
  0x25   :  { %217 = vsyncadd [#allocation5], 4294967232  ;;  %v40_v0 = vlaneseq  ;;  %v222_v1 = vmov 1966171168   ;;  %v223_v4 = vmov 1983009808  }
  0x26   :  { %v43_v2 = vunpack.c.l.s4 %v222_v1  ;;  %v120_v5 = vunpack.c.l.s4 %v223_v4  ;;  %v39_v11 = vld [vmem:[#allocation4] sm:$0xf]  ;;  %v37_v13 = vld [vmem:[#allocation2] sm:$0xff]  ;;  %v38_v14 = vld [vmem:[#allocation2 + $0x8] sm:$0xff]  ;;  %vm129_vm3 = vcmask 1041408   ;;  %vm80_vm4 = vcmask 1043456  }
  0x27   :  { %v41_v3 = vshrl.u32 %v40_v0, 7  ;;  %vm113_vm0 = vcmp.ge.s32.totalorder %v39_v11, 0  ;;  %vm114_vm1 = vcmp.lt.s32.totalorder %v39_v11, 4  ;;  %v72_v16 = vcombine.high %v37_v13, %v37_v13 }
  0x28   :  { %v44_v6 = vunpack.c.0.s8 %v43_v2  ;;  %v121_v7 = vunpack.c.0.s8 %v120_v5  ;;  %vm115_vm2 = vmand %vm113_vm0, %vm114_vm1  ;;  %v73_v17 = vcombine.high %v38_v14, %v38_v14  ;;  %v224_v18 = vmov 0.0  }
  0x29   :  { %v52_v9 = vsub.s32 0, %v41_v3  ;;  %v56_v10 = vsub.s32 1, %v41_v3  ;;  %v154_v19 = vsel %vm115_vm2, 1.0, %v224_v18  ;;  %v97_v24 = vsel %vm80_vm4, %v37_v13, 0.0 }
  0x2a   :  { %v47_v8 = vsub.s32 %v44_v6, %v41_v3  ;;  %v124_v12 = vsub.s32 %v121_v7, %v41_v3  ;;  %v98_v25 = vsel %vm80_vm4, %v72_v16, 0.0  ;;  %v100_v26 = vsel %vm80_vm4, %v38_v14, 0.0 }
  0x2b   :  { %v99_v42 = vadd.f32 %v98_v25, %v97_v24  ;;  %v102_v45 = vsel %vm80_vm4, %v73_v17, 0.0 }
  0x2c   :  { %v48_v15 = vrot.slane %v39_v11, %v47_v8  ;;  %v125_v23 = vrot.slane %v154_v19, %v124_v12 }
  0x2d   :  { %v101_v44 = vadd.f32 %v100_v26, %v99_v42 }
  0x2e   :  { %v49_v20 = vcombine.high %v48_v15, %v48_v15  ;;  %v53_v21 = vrot.slane %v48_v15, %v52_v9  ;;  %v57_v22 = vrot.slane %v48_v15, %v56_v10  ;;  %v126_v29 = vcombine.high %v125_v23, %v125_v23 }
  0x2f   :  { %v130_v30 = vsel %vm129_vm3, %v125_v23, 0.0  ;;  %v103_v47 = vadd.f32 %v102_v45, %v101_v44 }
  0x30   :  { %v61_v27 = vrot.slane %v49_v20, %v52_v9  ;;  %v65_v28 = vrot.slane %v49_v20, %v56_v10  ;;  %vm66_vm5 = vcmp.eq.s32.totalorder %v53_v21, %v41_v3  ;;  %vm67_vm6 = vcmp.eq.s32.totalorder %v57_v22, %v41_v3 }
  0x31   :  { %v76_v31 = vsel %vm66_vm5, %v37_v13, 0.0  ;;  %v77_v32 = vsel %vm67_vm6, %v72_v16, 0.0  ;;  %v131_v35 = vsel %vm129_vm3, %v126_v29, 0.0 }
  0x32   :  { %vm68_vm7 = vcmp.eq.s32.totalorder %v61_v27, %v41_v3  ;;  %vm69_vm8 = vcmp.eq.s32.totalorder %v65_v28, %v41_v3  ;;  %v81_v33 = vsel %vm80_vm4, %v76_v31, 0.0  ;;  %v82_v34 = vsel %vm80_vm4, %v77_v32, 0.0 }
  0x33   :  { %v78_v36 = vsel %vm68_vm7, %v38_v14, 0.0  ;;  %v79_v37 = vsel %vm69_vm8, %v73_v17, 0.0  ;;  %v83_v38 = vadd.f32 %v82_v34, %v81_v33  ;;  %v132_v39 = vadd.f32 %v131_v35, %v130_v30 }
  0x34   :  { %v84_v40 = vsel %vm80_vm4, %v78_v36, 0.0  ;;  %v86_v41 = vsel %vm80_vm4, %v79_v37, 0.0 }
  0x35   :  { %v85_v43 = vadd.f32 %v84_v40, %v83_v38  ;;  %133 = vadd.xlane.f32.xlu1 %v132_v39 }
  0x37   :  { %v87_v46 = vadd.f32 %v86_v41, %v85_v43 }
  0x39   :  { %88 = vadd.xlane.f32.xlu0 %v87_v46 }
  0x3d   :  { %104 = vadd.xlane.f32.xlu0 %v103_v47 }
  0xc2   :  { %v134_v48 = vpop.xlane.xlu1 %133 }
  0xc3   :  { %v135_v49 = vrot.slane %v134_v48, 4 }
  0xc5   :  { %v136_v50 = vadd.f32 %v135_v49, %v134_v48 }
  0xc6   :  { %v89_v51 = vpop.xlane.xlu0 %88 }
  0xc7   :  { %v90_v52 = vrot.slane %v89_v51, 4  ;;  %v137_v54 = vrot.slane %v136_v50, 2 }
  0xc9   :  { %v91_v53 = vadd.f32 %v90_v52, %v89_v51  ;;  %v138_v60 = vadd.f32 %v137_v54, %v136_v50 }
  0xca   :  { %v105_v55 = vpop.xlane.xlu0 %104 }
  0xcb   :  { %v92_v56 = vrot.slane %v91_v53, 2  ;;  %v106_v57 = vrot.slane %v105_v55, 4  ;;  %v139_v1 = vrot.slane %v138_v60, 1 }
  0xcd   :  { %v107_v58 = vadd.f32 %v106_v57, %v105_v55  ;;  %v93_v59 = vadd.f32 %v92_v56, %v91_v53  ;;  %v140_v4 = vadd.f32 %v139_v1, %v138_v60 }
  0xcf   :  { %v108_v61 = vrot.slane %v107_v58, 2  ;;  %v94_v62 = vrot.slane %v93_v59, 1 }
  0xd1   :  { %v109_v63 = vadd.f32 %v108_v61, %v107_v58  ;;  %v95_v0 = vadd.f32 %v94_v62, %v93_v59 }
  0xd3   :  { %155 = vpush %v95_v0  ;;  %v110_v2 = vrot.slane %v109_v63, 1 }
  0xd5   :  { %v111_v3 = vadd.f32 %v110_v2, %v109_v63 }
  0xd7   :  { %157 = vpush %v111_v3 }
  0xd8   :  { %159 = vpush %v140_v4 }
 0x104   :  { %s156_s1 = spop %155 }
 0x105   :  { %v142_v5 = vstv %s156_s1 }
 0x106   :  { %143 = vst [vmem:[%s285_s2] sm:$0x1] %v142_v5 }
 0x108   :  { %s158_s8 = spop %157 }
 0x109   :  { %v144_v6 = vstv %s158_s8  ;;  %s160_s9 = spop %159 }
 0x10a   :  { %145 = vst [vmem:[%s285_s2 + $0x1] sm:$0x1] %v144_v6  ;;  %v146_v7 = vstv %s160_s9 }
 0x10b   :  { %147 = vst [vmem:[%s285_s2 + $0x2] sm:$0x1] %v146_v7 }
 0x10c   :  { %152 = vsyncpa [#allocation3], 1 }
 0x10d   :  { %153 = vsyncpa [#allocation5], 1 }

</bundles_post_ra>
